<compile_context>
chip_gen: v7x
topology: tpu7x:2x2x1
jax: 0.10.0
libtpu: 0.0.40
codegen_flags: <defaults>
</compile_context>

<pallas_src>
import functools

import jax
import jax.numpy as jnp
from jax.experimental import pallas as pl
from jax.experimental.pallas import tpu as pltpu


def _round_up(x, m):
    return ((x + m - 1) // m) * m


def padded_feat_dim(D):
    """Lane-dense K/N padding: 128 minimum, 256-aligned for v6e/v7x MXU when D > 128."""
    return 128 if D <= 128 else _round_up(D, 256)


def _vmem_capacity_bytes():
    # Generation-aware VMEM cap (64 MiB on v7x, 128 MiB on v5e/v6e); conservative fallback.
    try:
        return int(pltpu.get_tpu_info().vmem_capacity_bytes)
    except Exception:
        return 64 * 1024 * 1024


# ----------------------------------------------------------------------------
# Pallas kernels: mlp_head = ReLU -> Dropout -> Linear(D, D)
# ----------------------------------------------------------------------------
# Resident-W path: grid = (batch tiles,), full W stays in VMEM across the whole call.
def _head_resident_kernel(x_ref, w_ref, b_ref, out_ref):
    h = jnp.maximum(x_ref[...].astype(jnp.float32), 0.0)              # nn.ReLU (f32 math)
    y = jnp.dot(h.astype(jnp.bfloat16), w_ref[...],
                preferred_element_type=jnp.float32)                   # MXU, f32 accumulate
    out_ref[...] = (y + b_ref[...]).astype(out_ref.dtype)             # nn.Linear bias


def _head_resident_dropout_kernel(x_ref, m_ref, w_ref, b_ref, out_ref):
    h = jnp.maximum(x_ref[...].astype(jnp.float32), 0.0) * m_ref[...]  # ReLU -> Dropout
    y = jnp.dot(h.astype(jnp.bfloat16), w_ref[...],
                preferred_element_type=jnp.float32)
    out_ref[...] = (y + b_ref[...]).astype(out_ref.dtype)


# Streamed-W path: grid = (batch tiles, N tiles).  ReLU/dropout/cast of the x row tile is
# hoisted into a VMEM scratch computed once per row tile (j == 0) and reused for all j.
def _head_streamed_kernel(x_ref, w_ref, b_ref, out_ref, h_ref):
    @pl.when(pl.program_id(1) == 0)
    def _():
        h_ref[...] = jnp.maximum(x_ref[...].astype(jnp.float32), 0.0).astype(jnp.bfloat16)

    y = jnp.dot(h_ref[...], w_ref[...], preferred_element_type=jnp.float32)
    out_ref[...] = (y + b_ref[...]).astype(out_ref.dtype)


def _head_streamed_dropout_kernel(x_ref, m_ref, w_ref, b_ref, out_ref, h_ref):
    @pl.when(pl.program_id(1) == 0)
    def _():
        h = jnp.maximum(x_ref[...].astype(jnp.float32), 0.0) * m_ref[...]
        h_ref[...] = h.astype(jnp.bfloat16)

    y = jnp.dot(h_ref[...], w_ref[...], preferred_element_type=jnp.float32)
    out_ref[...] = (y + b_ref[...]).astype(out_ref.dtype)


def prepare_mlp_head_params(w, b):
    """Pad + cast the Linear weight/bias ONCE (cached in params, not rebuilt per forward)."""
    D = w.shape[0]
    assert w.shape == (D, D)
    Dp = padded_feat_dim(D)
    w_p = jnp.zeros((Dp, Dp), jnp.bfloat16).at[:D, :D].set(w.astype(jnp.bfloat16))
    b_p = jnp.zeros((1, Dp), jnp.float32).at[:, :D].set(
        jnp.reshape(b, (1, -1)).astype(jnp.float32))
    return w_p, b_p


def mlp_head_pallas(features, w_p, b_p, out_dim, *, dropout_rate=0.0, training=False,
                    rng_key=None, out_dtype=jnp.bfloat16):
    """Fused ReLU -> Dropout -> Linear(out_dim, out_dim) on pre-padded (bf16 W, f32 b)."""
    B, D = features.shape
    assert D == out_dim
    Dp = w_p.shape[0]
    assert w_p.shape == (Dp, Dp) and b_p.shape == (1, Dp) and Dp >= D

    # Batch tile: large (more W reuse per pass) but sublane-aligned.
    TM = min(256, _round_up(B, 8))
    Bp = _round_up(B, TM)

    # Keep x in its native dtype; only pad when the shape actually needs it.
    if (Bp, Dp) == (B, D):
        x_p = features
    else:
        x_p = jnp.zeros((Bp, Dp), features.dtype).at[:B, :D].set(features)
    ebytes_x = x_p.dtype.itemsize
    ebytes_out = jnp.dtype(out_dtype).itemsize

    use_dropout = bool(training) and float(dropout_rate) > 0.0
    inputs = [x_p]
    if use_dropout:
        if rng_key is None:
            rng_key = jax.random.PRNGKey(0)
        keep = jax.random.bernoulli(rng_key, 1.0 - float(dropout_rate), (Bp, Dp))
        mask = keep.astype(jnp.float32) * jnp.float32(1.0 / (1.0 - float(dropout_rate)))
        inputs.append(mask)
    inputs += [w_p, b_p]

    vmem_cap = _vmem_capacity_bytes()
    vmem_budget = int(vmem_cap * 0.7)

    in_row_bytes = TM * Dp * ebytes_x + (TM * Dp * 4 if use_dropout else 0)
    resident_fp = 2 * (in_row_bytes + Dp * Dp * 2 + Dp * 4 + TM * Dp * ebytes_out)
    use_resident = resident_fp <= vmem_budget

    n_batch_tiles = Bp // TM

    if use_resident:
        grid = (n_batch_tiles,)
        if use_dropout:
            kernel = _head_resident_dropout_kernel
            in_specs = [
                pl.BlockSpec((TM, Dp), lambda i: (i, 0)),   # x row tile
                pl.BlockSpec((TM, Dp), lambda i: (i, 0)),   # dropout mask row tile
                pl.BlockSpec((Dp, Dp), lambda i: (0, 0)),   # W fully resident
                pl.BlockSpec((1, Dp), lambda i: (0, 0)),    # bias
            ]
        else:
            kernel = _head_resident_kernel
            in_specs = [
                pl.BlockSpec((TM, Dp), lambda i: (i, 0)),
                pl.BlockSpec((Dp, Dp), lambda i: (0, 0)),
                pl.BlockSpec((1, Dp), lambda i: (0, 0)),
            ]
        out_specs = pl.BlockSpec((TM, Dp), lambda i: (i, 0))
        scratch_shapes = ()
        dim_sem = ("parallel",)
        footprint = resident_fp
        w_passes = 1
    else:
        # Streamed W over lane-dense N slabs; pick the biggest TN that divides Dp.
        if Dp % 512 == 0:
            TN = 512
        elif Dp % 256 == 0:
            TN = 256
        else:
            TN = 128
        grid = (n_batch_tiles, Dp // TN)
        if use_dropout:
            kernel = _head_streamed_dropout_kernel
            in_specs = [
                pl.BlockSpec((TM, Dp), lambda i, j: (i, 0)),   # x row tile
                pl.BlockSpec((TM, Dp), lambda i, j: (i, 0)),   # mask row tile
                pl.BlockSpec((Dp, TN), lambda i, j: (0, j)),   # W column slab
                pl.BlockSpec((1, TN), lambda i, j: (0, j)),    # bias slab
            ]
        else:
            kernel = _head_streamed_kernel
            in_specs = [
                pl.BlockSpec((TM, Dp), lambda i, j: (i, 0)),
                pl.BlockSpec((Dp, TN), lambda i, j: (0, j)),
                pl.BlockSpec((1, TN), lambda i, j: (0, j)),
            ]
        out_specs = pl.BlockSpec((TM, TN), lambda i, j: (i, j))
        scratch_shapes = (pltpu.VMEM((TM, Dp), jnp.bfloat16),)   # hoisted h row tile
        dim_sem = ("parallel", "arbitrary")
        footprint = (2 * (in_row_bytes + Dp * TN * 2 + TN * 4 + TM * TN * ebytes_out)
                     + TM * Dp * 2)
        w_passes = n_batch_tiles

    # Truthful HBM-traffic estimate (W re-read once per batch tile unless resident).
    bytes_accessed = (Bp * Dp * ebytes_x
                      + (Bp * Dp * 4 if use_dropout else 0)
                      + Dp * Dp * 2 * w_passes
                      + Dp * 4
                      + Bp * Dp * ebytes_out)
    cost = pl.CostEstimate(flops=2 * Bp * Dp * Dp, transcendentals=0,
                           bytes_accessed=int(bytes_accessed))

    vmem_limit = int(min(max(footprint + (2 << 20), 16 << 20), vmem_cap))

    out_p = pl.pallas_call(
        kernel,
        out_shape=jax.ShapeDtypeStruct((Bp, Dp), out_dtype),
        grid=grid,
        in_specs=in_specs,
        out_specs=out_specs,
        scratch_shapes=scratch_shapes,
        compiler_params=pltpu.CompilerParams(
            dimension_semantics=dim_sem,
            vmem_limit_bytes=vmem_limit),
        cost_estimate=cost,
    )(*inputs)

    return out_p[:B, :D]


# ----------------------------------------------------------------------------
# Stand-in backbone (plain JAX glue; deterministic).
# ----------------------------------------------------------------------------
# TODO(synk): the real backbone is an arbitrary external nn.Module passed into DLLAModel's
# __init__; it has no definition here, so a deterministic mean-pool + per-modality
# projection stand-in produces the (B, base_dim) features.  Left in plain JAX so XLA fuses it.
def synthetic_backbone(text, text_keyword, text_keyframe, video, audio, proj_params):
    feats = None
    for x, w in zip((text, text_keyword, text_keyframe, video, audio), proj_params):
        f = jnp.mean(x, axis=1) @ w       # (B, D_mod) @ (D_mod, base_dim)
        feats = f if feats is None else feats + f
    return feats


# ----------------------------------------------------------------------------
# DLLAModel forward
# ----------------------------------------------------------------------------
def dlla_forward(params, text, text_keyword, text_keyframe, video, audio,
                 mode="train-mm", *, dropout_rate=0.0, training=False, rng_key=None):
    features = synthetic_backbone(text, text_keyword, text_keyframe, video, audio,
                                  params["backbone_proj"])
    mlp_output = mlp_head_pallas(features, params["mlp_w_padded"], params["mlp_b_padded"],
                                 params["base_dim"], dropout_rate=dropout_rate,
                                 training=training, rng_key=rng_key)
    if mode == "pretrain-mm":
        return mlp_output
    elif mode == "train-mm":
        return features, mlp_output
    else:
        raise ValueError(f"unsupported mode: {mode}")


def init_params(key, base_dim, modality_dims):
    keys = jax.random.split(key, len(modality_dims) + 2)
    proj = [
        jax.random.normal(k, (d, base_dim), jnp.float32) / jnp.sqrt(d)
        for k, d in zip(keys[: len(modality_dims)], modality_dims)
    ]
    mlp_w = jax.random.normal(keys[-2], (base_dim, base_dim), jnp.float32) / jnp.sqrt(
        base_dim)
    mlp_b = jax.random.normal(keys[-1], (1, base_dim), jnp.float32) * 0.01
    # Pad + cast the head weights ONCE here (not per forward call).
    w_p, b_p = prepare_mlp_head_params(mlp_w, mlp_b)
    return {"backbone_proj": proj, "mlp_w": mlp_w, "mlp_b": mlp_b,
            "mlp_w_padded": w_p, "mlp_b_padded": b_p, "base_dim": base_dim}


if __name__ == "__main__":
    B, S = 2, 8
    base_dim = 32
    modality_dims = (16, 16, 16, 24, 20)  # text, keyword, keyframe, video, audio

    key = jax.random.PRNGKey(0)
    k_in, k_p = jax.random.split(key)
    k_t, k_kw, k_kf, k_v, k_a = jax.random.split(k_in, 5)

    text = jax.random.normal(k_t, (B, S, modality_dims[0]), jnp.float32)
    text_keyword = jax.random.normal(k_kw, (B, S, modality_dims[1]), jnp.float32)
    text_keyframe = jax.random.normal(k_kf, (B, S, modality_dims[2]), jnp.float32)
    video = jax.random.normal(k_v, (B, S, modality_dims[3]), jnp.float32)
    audio = jax.random.normal(k_a, (B, S, modality_dims[4]), jnp.float32)

    params = init_params(k_p, base_dim, modality_dims)

    # Eval-mode forward (dropout = identity), checked against a bf16-matched reference.
    features, mlp_output = dlla_forward(
        params, text, text_keyword, text_keyframe, video, audio, mode="train-mm"
    )
    jax.block_until_ready((features, mlp_output))

    ref = (jnp.dot(
        jnp.maximum(features, 0.0).astype(jnp.bfloat16),
        params["mlp_w"].astype(jnp.bfloat16),
        preferred_element_type=jnp.float32,
    ) + params["mlp_b"]).astype(jnp.bfloat16)
    assert features.shape == (B, base_dim)
    assert mlp_output.shape == (B, base_dim)
    assert jnp.allclose(mlp_output.astype(jnp.float32), ref.astype(jnp.float32),
                        atol=2e-2, rtol=2e-2)

    # Training-mode forward exercises the fused dropout path (mask streamed into the kernel).
    mlp_train = mlp_head_pallas(features, params["mlp_w_padded"], params["mlp_b_padded"],
                                base_dim, dropout_rate=0.3, training=True,
                                rng_key=jax.random.PRNGKey(123))
    jax.block_until_ready(mlp_train)
    assert mlp_train.shape == (B, base_dim)
    assert bool(jnp.all(jnp.isfinite(mlp_train.astype(jnp.float32))))

    print("KERNEL_OK")
</pallas_src>

<mosaic_0001>
module attributes {stable_mosaic.version = 11 : i64} {
  func.func @_head_resident_kernel(%arg0: i32, %arg1: memref<8x128xf32, #tpu.memory_space<vmem>>, %arg2: memref<128x128xbf16, #tpu.memory_space<vmem>>, %arg3: memref<1x128xf32, #tpu.memory_space<vmem>>, %arg4: memref<8x128xbf16, #tpu.memory_space<vmem>>) attributes {dimension_semantics = [#tpu.dimension_semantics<parallel>], iteration_bounds = array<i64: 1>, scalar_prefetch = 0 : i64, scratch_operands = 0 : i64, tpu.core_type = #tpu.core_type<tc>, window_params = [{transform_indices = @transform_0, window_bounds = array<i64: 8, 128>}, {pipeline_mode = #tpu.pipeline_mode<synchronous>, transform_indices = @transform_1, window_bounds = array<i64: 128, 128>}, {pipeline_mode = #tpu.pipeline_mode<synchronous>, transform_indices = @transform_2, window_bounds = array<i64: 1, 128>}, {transform_indices = @transform_3, window_bounds = array<i64: 8, 128>}]} {
    %c0 = arith.constant 0 : index
    %c0_0 = arith.constant 0 : index
    %0 = vector.load %arg1[%c0, %c0_0] : memref<8x128xf32, #tpu.memory_space<vmem>>, vector<8x128xf32>
    %cst = arith.constant 0.000000e+00 : f32
    %1 = vector.broadcast %cst : f32 to vector<8x128xf32>
    %2 = arith.maximumf %0, %1 : vector<8x128xf32>
    %3 = arith.truncf %2 : vector<8x128xf32> to vector<8x128xbf16>
    %c0_1 = arith.constant 0 : index
    %c0_2 = arith.constant 0 : index
    %4 = vector.load %arg2[%c0_1, %c0_2] : memref<128x128xbf16, #tpu.memory_space<vmem>>, vector<128x128xbf16>
    %cst_3 = arith.constant dense<0.000000e+00> : vector<8x128xf32>
    %5 = tpu.matmul %3, %4, %cst_3 {dimension_numbers = #tpu.dot_dimension_numbers<[1], [0], [0], [1], [0, 0, 1, 1], [], []>} : vector<8x128xbf16>, vector<128x128xbf16>, vector<8x128xf32> -> vector<8x128xf32>
    %c0_4 = arith.constant 0 : index
    %c0_5 = arith.constant 0 : index
    %6 = vector.load %arg3[%c0_4, %c0_5] : memref<1x128xf32, #tpu.memory_space<vmem>>, vector<1x128xf32>
    %7 = vector.broadcast %6 : vector<1x128xf32> to vector<8x128xf32>
    %8 = arith.addf %5, %7 : vector<8x128xf32>
    %9 = arith.truncf %8 : vector<8x128xf32> to vector<8x128xbf16>
    %c0_6 = arith.constant 0 : index
    %c0_7 = arith.constant 0 : index
    %10 = vector.load %arg4[%c0_6, %c0_7] : memref<8x128xbf16, #tpu.memory_space<vmem>>, vector<8x128xbf16>
    tpu.vector_store %arg4[%c0_6, %c0_7], %9 {strides = array<i32>} : memref<8x128xbf16, #tpu.memory_space<vmem>>, vector<8x128xbf16>,
    return
  }
  func.func @transform_0(%arg0: i32) -> (i32, i32) {
    %c0_i32 = arith.constant 0 : i32
    %c0_i32_0 = arith.constant 0 : i32
    return %arg0, %c0_i32 : i32, i32
  }
  func.func @transform_1(%arg0: i32) -> (i32, i32) {
    %c0_i32 = arith.constant 0 : i32
    %c0_i32_0 = arith.constant 0 : i32
    %c0_i32_1 = arith.constant 0 : i32
    return %c0_i32, %c0_i32_0 : i32, i32
  }
  func.func @transform_2(%arg0: i32) -> (i32, i32) {
    %c0_i32 = arith.constant 0 : i32
    %c0_i32_0 = arith.constant 0 : i32
    %c0_i32_1 = arith.constant 0 : i32
    return %c0_i32, %c0_i32_0 : i32, i32
  }
  func.func @transform_3(%arg0: i32) -> (i32, i32) {
    %c0_i32 = arith.constant 0 : i32
    %c0_i32_0 = arith.constant 0 : i32
    return %arg0, %c0_i32 : i32, i32
  }
}

</mosaic_0001>

<bundles_post_ra>
// kernel: tpu_custom_call.1
= control target key start
LH: loop header
LB: loop body
LE: loop exit
PB: predicated region body
PF: predicated region fallthrough
CT: control target
= control target key end

     0   :  { %8 = vsyncpa [#allocation3], 0  ;;  %s372_s0 = inlined_call_operand.hbm [shape: f32[8,128], index: 0, kind: input, shape index: {}]   ;;  %s373_s1 = inlined_call_operand.hbm [shape: bf16[128,128], index: 1, kind: input, shape index: {}]   ;;  %s374_s2 = inlined_call_operand.vmem [shape: f32[1,128], index: 2, kind: input, shape index: {}]   ;;  %s375_s3 = inlined_call_operand.hbm [shape: bf16[8,128], index: 3, kind: output, shape index: {}]  }
   0x1   :  { %9 = vsyncpa [#allocation6], 0 }
   0x2   :  { %10 = vsyncpa [#allocation4], 0  ;;  %s299_s12 = smov [#allocation2]   ;;  %s300_s14 = smov [#allocation5]  }
   0x3   :  { %s17_s13 = sshll.u32 %s299_s12, 4  ;;  %s26_s15 = sshll.u32 %s300_s14, 4  ;;  %s18_s13 = int_to_ptr.vmem [resolvable:$true] %s17_s13  ;;  %s326_s15 = int_to_ptr.vmem [resolvable:$true] %s26_s15 }
   0x4   :  { %s227_s18 = scalar_lea.hbm %s372_s0, 128 }
   0x5   :  { %p228_p0 = scmp.ne.s32.totalorder %s372_s0, %s227_s18  ;;  %p231_p1 = scmp.lt.u32.totalorder %s227_s18, %s372_s0 }
   0x7   :  { %p233_p2 = pnand %p231_p1, %p228_p0 }
   0x9   :  { %236 = shalt.err (!%p233_p2)
}
   0xa   :  { %s237_s23 = scalar_lea.vmem %s18_s13, 128  ;;  %p242_p4 = scmp.lt.s32.totalorder %s18_s13, %s18_s13 }
   0xb   :  { %p238_p3 = scmp.ne.s32.totalorder %s18_s13, %s237_s23  ;;  %p243_p5 = scmp.lt.s32.totalorder %s237_s23, %s237_s23 }
   0xd   :  { %p244_p6 = por %p243_p5, %p242_p4 }
   0xf   :  { %p245_p7 = pnand %p244_p6, %p238_p3 }
  0x11   :  { %248 = shalt.err (!%p245_p7)
}
  0x12   :  { %20 = dma.hbm_to_vmem [thread:$0]  %s372_s0, 128, %s18_s13, [#allocation3]  }
  0x13   :  { %s249_s28 = scalar_lea.hbm %s373_s1, 1024 }
  0x14   :  { %p250_p8 = scmp.ne.s32.totalorder %s373_s1, %s249_s28  ;;  %p253_p9 = scmp.lt.u32.totalorder %s249_s28, %s373_s1 }
  0x16   :  { %p255_p10 = pnand %p253_p9, %p250_p8 }
  0x18   :  { %258 = shalt.err (!%p255_p10)
}
  0x19   :  { %s259_s6 = scalar_lea.vmem %s326_s15, 1024  ;;  %p264_p12 = scmp.lt.s32.totalorder %s326_s15, %s326_s15 }
  0x1a   :  { %p260_p11 = scmp.ne.s32.totalorder %s326_s15, %s259_s6  ;;  %p265_p13 = scmp.lt.s32.totalorder %s259_s6, %s259_s6 }
  0x1c   :  { %p266_p0 = por %p265_p13, %p264_p12 }
  0x1e   :  { %p267_p1 = pnand %p266_p0, %p260_p11 }
  0x20   :  { %270 = shalt.err (!%p267_p1)
}
  0x21   :  { %s301_s0 = smov 64   ;;  %s302_s7 = smov 4  }
  0x22   :  { %32 = dma.hbm_to_vmem [thread:$0]  %s373_s1, 1024, %s326_s15, [#allocation6], %s301_s0, %s301_s0, %s302_s7  }
  0x23   :  { %293 = dma.done.wait [#allocation3], 128  }
  0x24   :  { %294 = vsyncadd [#allocation3], 4294967168 }
  0x25   :  { %295 = dma.done.wait [#allocation6], 1024  }
  0x26   :  { %296 = vsyncadd [#allocation6], 4294966272  ;;  %v303_v0 = vmov 0.0   ;;  %vm304_vm0 = vmmov 0   ;;  %v219_v1 = vld [vmem:[#allocation5] sm:$0xff]   ;;  %v220_v2 = vld [vmem:[#allocation5 + $0x8] sm:$0xff]  }
  0x27   :  { %192 = vmatprep.subr.bf16.mxu0 %v303_v0  ;;  %208 = vmatprep.mubr.msk.bf16.mxu0 %vm304_vm0, %v303_v0  ;;  %v221_v3 = vld [vmem:[#allocation5 + $0x10] sm:$0xff]   ;;  %v222_v4 = vld [vmem:[#allocation5 + $0x18] sm:$0xff]   ;;  %v223_v5 = vld [vmem:[#allocation5 + $0x20] sm:$0xff]   ;;  %s305_s11 = smov [#allocation7]  }
  0x28   :  { %193 = vmatpush3.bf16.msra.mxu0 %v219_v1  ;;  %v224_v6 = vld [vmem:[#allocation5 + $0x28] sm:$0xff]   ;;  %v225_v7 = vld [vmem:[#allocation5 + $0x30] sm:$0xff]   ;;  %v42_v8 = vld [vmem:[#allocation2] sm:$0xff]  ;;  %s164_s12 = sshll.u32 %s305_s11, 4  ;;  %s165_s12 = int_to_ptr.vmem [resolvable:$true] %s164_s12 }
  0x29   :  { %194 = vmatprep.subr.bf16.mxu0 %v303_v0  ;;  %v43_v9 = vmax.f32 %v42_v8, 0.0  ;;  %v226_v10 = vld [vmem:[#allocation5 + $0x38] sm:$0xff]   ;;  %s271_s13 = scalar_lea.vmem %s165_s12, 64  ;;  %p276_p3 = scmp.lt.s32.totalorder %s165_s12, %s165_s12 }
  0x2a   :  { %v174_v12 = vld [vmem:[%s374_s2] ss:$0 sm:$0xff]  ;;  %p272_p2 = scmp.ne.s32.totalorder %s165_s12, %s271_s13  ;;  %p277_p4 = scmp.lt.s32.totalorder %s271_s13, %s271_s13 }
  0x2b   :  { %v44_v11 = vpack.c.bf16 %v43_v9, %v43_v9 }
  0x2c   :  { %195 = vmatpush3.bf16.msra.mxu0 %v220_v2  ;;  %p278_p5 = por %p277_p4, %p276_p3 }
  0x2d   :  { %196 = vmatprep.subr.bf16.mxu0 %v303_v0 }
  0x2e   :  { %p279_p6 = pnand %p278_p5, %p272_p2 }
  0x30   :  { %197 = vmatpush3.bf16.msra.mxu0 %v221_v3 }
  0x31   :  { %198 = vmatprep.subr.bf16.mxu0 %v303_v0 }
  0x34   :  { %199 = vmatpush3.bf16.msra.mxu0 %v222_v4 }
  0x35   :  { %200 = vmatprep.subr.bf16.mxu0 %v303_v0 }
  0x38   :  { %201 = vmatpush3.bf16.msra.mxu0 %v223_v5 }
  0x39   :  { %202 = vmatprep.subr.bf16.mxu0 %v303_v0 }
  0x3c   :  { %203 = vmatpush3.bf16.msra.mxu0 %v224_v6 }
  0x3d   :  { %204 = vmatprep.subr.bf16.mxu0 %v303_v0 }
  0x40   :  { %205 = vmatpush3.bf16.msra.mxu0 %v225_v7 }
  0x41   :  { %206 = vmatprep.subr.bf16.mxu0 %v303_v0 }
  0x44   :  { %207 = vmatpush3.bf16.msra.mxu0 %v226_v10 }
  0x47   :  { %209 = vmatmul.mubr.bf16.vlgmr.msra.gmra.mrb[0].mxu0 %v44_v11 }
 0x11a   :  { %v150_v13 = vpop.f32.mrb[0].mxu0 }
 0x11b   :  { %v151_v14 = vadd.f32 %v174_v12, %v150_v13  ;;  %v210_v15 = vpop.f32.mrb[1].mxu0 }
 0x11c   :  { %v153_v16 = vpop.f32.mrb[2].mxu0 }
 0x11d   :  { %v156_v17 = vpack.c.bf16 %v151_v14, %v151_v14  ;;  %v211_v18 = vpop.f32.mrb[3].mxu0 }
 0x11f   :  { %157 = vst [vmem:[#allocation7] sm:$0xf] %v156_v17 }
 0x120   :  { %282 = shalt.err (!%p279_p6)
}
 0x121   :  { %s283_s2 = scalar_lea.hbm %s375_s3, 64 }
 0x122   :  { %p284_p7 = scmp.ne.s32.totalorder %s375_s3, %s283_s2  ;;  %p287_p8 = scmp.lt.u32.totalorder %s283_s2, %s375_s3 }
 0x124   :  { %p289_p9 = pnand %p287_p8, %p284_p7 }
 0x126   :  { %292 = shalt.err (!%p289_p9)
}
 0x127   :  { %167 = dma.vmem_to_hbm [thread:$0]  %s165_s12, 64, %s375_s3, [#allocation4]  }
 0x128   :  { %297 = dma.done.wait [#allocation4], 64  }
 0x129   :  { %298 = vsyncadd [#allocation4], 4294967232 }
 0x12a   :  { %171 = vsyncpa [#allocation3], 1 }
 0x12b   :  { %172 = vsyncpa [#allocation6], 1 }
 0x12c   :  { %173 = vsyncpa [#allocation4], 1 }

</bundles_post_ra>
